<compile_context>
chip_gen: v6e
topology: v6e:2x2x1
jax: 0.10.0
libtpu: 0.0.40
codegen_flags: <defaults>
</compile_context>

<pallas_src>
import functools

import jax
import jax.numpy as jnp
from jax.experimental import pallas as pl
from jax.experimental.pallas import tpu as pltpu


LANE = 128     # lane width: K of layer 1 and the attr output are padded to this
HIDDEN = 1024


def _round_up(x, m):
    return ((x + m - 1) // m) * m


def _cdiv(a, b):
    return -(-a // b)


# --------------------------------------------------------------------------
# Kernel
# --------------------------------------------------------------------------
def attdec_kernel(h_ref, w1_ref, b1_ref, w2_ref, b2_ref, out_ref):
    # ----- Linear 1: single lane-dense bf16 matmul (concat/K-pad done outside),
    #       f32 accumulation + f32 bias -----
    z1 = jnp.dot(h_ref[...], w1_ref[...],
                 preferred_element_type=jnp.float32) + b1_ref[...]
    # ----- LeakyReLU(0.2) fused with the bf16 downcast feeding the 2nd matmul -----
    z1b = z1.astype(jnp.bfloat16)
    a1 = jnp.maximum(z1b, 0.2 * z1b)          # exact LeakyReLU up to bf16 rounding
    # ----- Linear 2: (TB, H) @ (H, Ap) + (1, Ap)  [Ap = attr_dim padded to 128] -----
    z2 = jnp.dot(a1, w2_ref[...], preferred_element_type=jnp.float32) + b2_ref[...]
    # ----- Sigmoid (EUP) + lane-dense bf16 store -----
    out_ref[...] = jax.nn.sigmoid(z2).astype(out_ref.dtype)


# --------------------------------------------------------------------------
# Wrapper
# --------------------------------------------------------------------------
def _choose_tile(B, block_b):
    """Batch tile minimizing padding, sublane-aligned, with >=2 grid steps
    whenever the batch allows it (v7x has 2 TensorCores)."""
    n_tiles = max(1, _cdiv(B, block_b))
    if n_tiles == 1 and B > 8:
        n_tiles = 2
    TB = _round_up(_cdiv(B, n_tiles), 8)
    Bp = _round_up(B, TB)
    return TB, Bp


def attdec_forward(x, att, packed_params, *, block_b=1024):
    """Runs the AttDec MLP.

    `packed_params` = (w1_padded, b1, w2_padded, b2) from `pack_params`.
    If `att` is None, `x` is interpreted as the pre-concatenated input h
    (visual_dim + attr_dim features), matching the PyTorch module.
    """
    w1p, b1, w2p, b2 = packed_params
    Kp, H = w1p.shape              # K padded to a multiple of 128
    Ap = w2p.shape[1]              # attr_dim padded to a multiple of 128
    Da = b2.shape[1]               # true attr_dim (static)

    h = jnp.concatenate([x, att], axis=1) if att is not None else x
    h = h.astype(jnp.bfloat16)     # bf16 activations across the call boundary
    B, Din = h.shape

    TB, Bp = _choose_tile(B, block_b)
    # One pad: batch rows to Bp, feature lanes to Kp (zero rows of W1p make the
    # extra lanes inert).
    h = jnp.pad(h, ((0, Bp - B), (0, Kp - Din)))
    b2p = jnp.pad(b2.astype(jnp.float32), ((0, 0), (0, Ap - Da)))

    grid = (Bp // TB,)
    tiled = lambda shape: pl.BlockSpec(shape, lambda i: (i, 0))   # batch-tiled
    const = lambda shape: pl.BlockSpec(shape, lambda i: (0, 0))   # VMEM-resident

    flops = 2 * Bp * Kp * H + 2 * Bp * H * Ap
    bytes_accessed = int(
        h.size * h.dtype.itemsize
        + w1p.size * w1p.dtype.itemsize + w2p.size * w2p.dtype.itemsize
        + b1.size * b1.dtype.itemsize + b2p.size * b2p.dtype.itemsize
        + Bp * Ap * 2)                       # bf16 output writeback
    cost = pl.CostEstimate(flops=flops, transcendentals=Bp * Ap,
                           bytes_accessed=bytes_accessed)

    out = pl.pallas_call(
        attdec_kernel,
        out_shape=jax.ShapeDtypeStruct((Bp, Ap), jnp.bfloat16),
        grid=grid,
        in_specs=[
            tiled((TB, Kp)),      # h = [x | att | 0-pad]  (bf16, lane-dense)
            const((Kp, H)),       # W1 (resident, bf16, K-padded)
            const((1, H)),        # b1 (resident, f32)
            const((H, Ap)),       # W2 (resident, bf16, lane-padded)
            const((1, Ap)),       # b2 (resident, f32, lane-padded)
        ],
        out_specs=tiled((TB, Ap)),
        compiler_params=pltpu.CompilerParams(
            dimension_semantics=("parallel",),    # shard batch over TCs (v7x)
            vmem_limit_bytes=32 << 20),           # headroom for TB up to 1024 (v5e)
        cost_estimate=cost,
    )(h, w1p, b1, w2p, b2p)

    return out[:B, :Da].astype(jnp.float32)


# --------------------------------------------------------------------------
# Parameter handling
# --------------------------------------------------------------------------
def init_params(key, visual_dim, attr_dim, hidden=HIDDEN):
    """f32 'logical' params mirroring weight_init: Linear weights ~ N(0, 0.02)."""
    k1, k2, k3, k4 = jax.random.split(key, 4)
    in_dim = visual_dim + attr_dim
    w1 = 0.02 * jax.random.normal(k1, (in_dim, hidden), dtype=jnp.float32)
    w2 = 0.02 * jax.random.normal(k2, (hidden, attr_dim), dtype=jnp.float32)
    b1 = 0.01 * jax.random.normal(k3, (1, hidden), dtype=jnp.float32)
    b2 = 0.01 * jax.random.normal(k4, (1, attr_dim), dtype=jnp.float32)
    return (w1, b1, w2, b2)


def pack_params(params, visual_dim, lane=LANE):
    """Cast weights to bf16, zero-pad W1's K to 128 and W2's output cols to 128."""
    del visual_dim  # concat fusion no longer needs the split point
    w1, b1, w2, b2 = params
    in_dim, _ = w1.shape
    attr_dim = w2.shape[1]
    Kp = _round_up(in_dim, lane)
    Ap = _round_up(attr_dim, lane)
    w1p = jnp.pad(w1, ((0, Kp - in_dim), (0, 0))).astype(jnp.bfloat16)
    w2p = jnp.pad(w2, ((0, 0), (0, Ap - attr_dim))).astype(jnp.bfloat16)
    # b2 kept at its true width (f32) so the wrapper can recover attr_dim statically.
    return (w1p, b1.astype(jnp.float32), w2p, b2.astype(jnp.float32))


# --------------------------------------------------------------------------
# Pure-JAX reference (f32, matches PyTorch semantics)
# --------------------------------------------------------------------------
def reference_forward(x, att, params):
    h = jnp.concatenate([x, att], axis=1) if att is not None else x
    w1, b1, w2, b2 = params
    z1 = h @ w1 + b1
    a1 = jnp.where(z1 > 0, z1, 0.2 * z1)
    z2 = a1 @ w2 + b2
    return jax.nn.sigmoid(z2)


if __name__ == "__main__":
    key = jax.random.PRNGKey(0)
    kx, ka, kp = jax.random.split(key, 3)

    batch = 2
    visual_dim = 32
    attr_dim = 16

    x = jax.random.normal(kx, (batch, visual_dim), dtype=jnp.float32)
    att = jax.random.normal(ka, (batch, attr_dim), dtype=jnp.float32)

    params = init_params(kp, visual_dim, attr_dim)
    packed = pack_params(params, visual_dim)

    fwd = jax.jit(functools.partial(attdec_forward, block_b=1024))
    out = fwd(x, att, packed)
    out = jax.block_until_ready(out)

    ref = reference_forward(x, att, params)
    assert out.shape == (batch, attr_dim), out.shape
    # bf16 matmuls + bf16 output vs f32 reference -> loose tolerance
    # (sigmoid outputs in [0,1], bf16 step ~4e-3).
    assert jnp.allclose(out, ref, atol=1e-2, rtol=1e-2), "mismatch vs reference"

    print("KERNEL_OK")
</pallas_src>

<mosaic_0001>
module attributes {stable_mosaic.version = 11 : i64} {
  func.func @attdec_kernel(%arg0: i32, %arg1: memref<8x128xbf16, #tpu.memory_space<vmem>>, %arg2: memref<128x1024xbf16, #tpu.memory_space<vmem>>, %arg3: memref<1x1024xf32, #tpu.memory_space<vmem>>, %arg4: memref<1024x128xbf16, #tpu.memory_space<vmem>>, %arg5: memref<1x128xf32, #tpu.memory_space<vmem>>, %arg6: memref<8x128xbf16, #tpu.memory_space<vmem>>) attributes {dimension_semantics = [#tpu.dimension_semantics<parallel>], iteration_bounds = array<i64: 1>, scalar_prefetch = 0 : i64, scratch_operands = 0 : i64, tpu.core_type = #tpu.core_type<tc>, window_params = [{transform_indices = @transform_0, window_bounds = array<i64: 8, 128>}, {pipeline_mode = #tpu.pipeline_mode<synchronous>, transform_indices = @transform_1, window_bounds = array<i64: 128, 1024>}, {pipeline_mode = #tpu.pipeline_mode<synchronous>, transform_indices = @transform_2, window_bounds = array<i64: 1, 1024>}, {pipeline_mode = #tpu.pipeline_mode<synchronous>, transform_indices = @transform_3, window_bounds = array<i64: 1024, 128>}, {pipeline_mode = #tpu.pipeline_mode<synchronous>, transform_indices = @transform_4, window_bounds = array<i64: 1, 128>}, {transform_indices = @transform_5, window_bounds = array<i64: 8, 128>}]} {
    %c0 = arith.constant 0 : index
    %c0_0 = arith.constant 0 : index
    %0 = vector.load %arg1[%c0, %c0_0] : memref<8x128xbf16, #tpu.memory_space<vmem>>, vector<8x128xbf16>
    %c0_1 = arith.constant 0 : index
    %c0_2 = arith.constant 0 : index
    %1 = vector.load %arg2[%c0_1, %c0_2] : memref<128x1024xbf16, #tpu.memory_space<vmem>>, vector<128x1024xbf16>
    %cst = arith.constant dense<0.000000e+00> : vector<8x1024xf32>
    %2 = tpu.matmul %0, %1, %cst {dimension_numbers = #tpu.dot_dimension_numbers<[1], [0], [0], [1], [0, 0, 1, 1], [], []>} : vector<8x128xbf16>, vector<128x1024xbf16>, vector<8x1024xf32> -> vector<8x1024xf32>
    %c0_3 = arith.constant 0 : index
    %c0_4 = arith.constant 0 : index
    %3 = vector.load %arg3[%c0_3, %c0_4] : memref<1x1024xf32, #tpu.memory_space<vmem>>, vector<1x1024xf32>
    %4 = vector.broadcast %3 : vector<1x1024xf32> to vector<8x1024xf32>
    %5 = arith.addf %2, %4 : vector<8x1024xf32>
    %6 = arith.truncf %5 : vector<8x1024xf32> to vector<8x1024xbf16>
    %cst_5 = arith.constant 2.001950e-01 : bf16
    %7 = vector.broadcast %cst_5 : bf16 to vector<8x1024xbf16>
    %8 = arith.mulf %7, %6 : vector<8x1024xbf16>
    %9 = arith.maximumf %6, %8 : vector<8x1024xbf16>
    %c0_6 = arith.constant 0 : index
    %c0_7 = arith.constant 0 : index
    %10 = vector.load %arg4[%c0_6, %c0_7] : memref<1024x128xbf16, #tpu.memory_space<vmem>>, vector<1024x128xbf16>
    %cst_8 = arith.constant dense<0.000000e+00> : vector<8x128xf32>
    %11 = tpu.matmul %9, %10, %cst_8 {dimension_numbers = #tpu.dot_dimension_numbers<[1], [0], [0], [1], [0, 0, 1, 1], [], []>} : vector<8x1024xbf16>, vector<1024x128xbf16>, vector<8x128xf32> -> vector<8x128xf32>
    %c0_9 = arith.constant 0 : index
    %c0_10 = arith.constant 0 : index
    %12 = vector.load %arg5[%c0_9, %c0_10] : memref<1x128xf32, #tpu.memory_space<vmem>>, vector<1x128xf32>
    %13 = vector.broadcast %12 : vector<1x128xf32> to vector<8x128xf32>
    %14 = arith.addf %11, %13 : vector<8x128xf32>
    %15 = arith.negf %14 : vector<8x128xf32>
    %16 = math.exp %15 : vector<8x128xf32>
    %cst_11 = arith.constant 1.000000e+00 : f32
    %17 = vector.broadcast %cst_11 : f32 to vector<8x128xf32>
    %18 = arith.addf %17, %16 : vector<8x128xf32>
    %19 = arith.divf %17, %18 : vector<8x128xf32>
    %20 = arith.truncf %19 : vector<8x128xf32> to vector<8x128xbf16>
    %c0_12 = arith.constant 0 : index
    %c0_13 = arith.constant 0 : index
    %21 = vector.load %arg6[%c0_12, %c0_13] : memref<8x128xbf16, #tpu.memory_space<vmem>>, vector<8x128xbf16>
    tpu.vector_store %arg6[%c0_12, %c0_13], %20 {strides = array<i32>} : memref<8x128xbf16, #tpu.memory_space<vmem>>, vector<8x128xbf16>,
    return
  }
  func.func @transform_0(%arg0: i32) -> (i32, i32) {
    %c0_i32 = arith.constant 0 : i32
    %c0_i32_0 = arith.constant 0 : i32
    return %arg0, %c0_i32 : i32, i32
  }
  func.func @transform_1(%arg0: i32) -> (i32, i32) {
    %c0_i32 = arith.constant 0 : i32
    %c0_i32_0 = arith.constant 0 : i32
    %c0_i32_1 = arith.constant 0 : i32
    return %c0_i32, %c0_i32_0 : i32, i32
  }
  func.func @transform_2(%arg0: i32) -> (i32, i32) {
    %c0_i32 = arith.constant 0 : i32
    %c0_i32_0 = arith.constant 0 : i32
    %c0_i32_1 = arith.constant 0 : i32
    return %c0_i32, %c0_i32_0 : i32, i32
  }
  func.func @transform_3(%arg0: i32) -> (i32, i32) {
    %c0_i32 = arith.constant 0 : i32
    %c0_i32_0 = arith.constant 0 : i32
    %c0_i32_1 = arith.constant 0 : i32
    return %c0_i32, %c0_i32_0 : i32, i32
  }
  func.func @transform_4(%arg0: i32) -> (i32, i32) {
    %c0_i32 = arith.constant 0 : i32
    %c0_i32_0 = arith.constant 0 : i32
    %c0_i32_1 = arith.constant 0 : i32
    return %c0_i32, %c0_i32_0 : i32, i32
  }
  func.func @transform_5(%arg0: i32) -> (i32, i32) {
    %c0_i32 = arith.constant 0 : i32
    %c0_i32_0 = arith.constant 0 : i32
    return %arg0, %c0_i32 : i32, i32
  }
}

</mosaic_0001>

<bundles_post_ra>
// kernel: attdec_forward.1
= control target key start
LH: loop header
LB: loop body
LE: loop exit
PB: predicated region body
PF: predicated region fallthrough
CT: control target
= control target key end

     0   :  { %10 = vsyncpa [#allocation3], 0  ;;  %s1780_s0 = inlined_call_operand.vmem [shape: bf16[8,128], index: 0, kind: input, shape index: {}]   ;;  %s1781_s1 = inlined_call_operand.hbm [shape: bf16[128,1024], index: 1, kind: input, shape index: {}]   ;;  %s1782_s2 = inlined_call_operand.vmem [shape: f32[1,1024], index: 2, kind: input, shape index: {}]   ;;  %s1783_s3 = inlined_call_operand.hbm [shape: bf16[1024,128], index: 3, kind: input, shape index: {}]   ;;  %s1784_s4 = inlined_call_operand.vmem [shape: f32[1,128], index: 4, kind: input, shape index: {}]   ;;  %s1785_s5 = inlined_call_operand.vmem [shape: bf16[8,128], index: 5, kind: output, shape index: {}]  }
   0x1   :  { %11 = vsyncpa [#allocation5], 0  ;;  %s1695_s18 = smov [#allocation2]  }
   0x2   :  { %s19_s19 = sshll.u32 %s1695_s18, 4  ;;  %s20_s19 = int_to_ptr.vmem [resolvable:$true] %s19_s19 }
   0x3   :  { %s1659_s20 = scalar_lea.vmem %s20_s19, 8192  ;;  %p1664_p1 = scmp.lt.s32.totalorder %s20_s19, %s20_s19 }
   0x4   :  { %p1660_p0 = scmp.ne.s32.totalorder %s20_s19, %s1659_s20  ;;  %p1665_p2 = scmp.lt.s32.totalorder %s1659_s20, %s1659_s20 }
   0x6   :  { %p1666_p3 = por %p1665_p2, %p1664_p1 }
   0x8   :  { %p1667_p4 = pnand %p1666_p3, %p1660_p0 }
   0xa   :  { %1670 = shalt.err (!%p1667_p4)
}
   0xb   :  { %s1696_s21 = smov 512   ;;  %s1697_s22 = smov 32  }
   0xc   :  { %25 = dma.hbm_to_vmem [thread:$0]  %s1781_s1, 8192, %s20_s19, [#allocation3], %s1696_s21, %s1696_s21, %s1697_s22  }
   0xd   :  { %s1698_s25 = smov [#allocation4]  }
   0xe   :  { %s33_s26 = sshll.u32 %s1698_s25, 4  ;;  %s34_s26 = int_to_ptr.vmem [resolvable:$true] %s33_s26 }
   0xf   :  { %s1679_s27 = scalar_lea.vmem %s34_s26, 8192  ;;  %p1684_p6 = scmp.lt.s32.totalorder %s34_s26, %s34_s26 }
  0x10   :  { %p1680_p5 = scmp.ne.s32.totalorder %s34_s26, %s1679_s27  ;;  %p1685_p7 = scmp.lt.s32.totalorder %s1679_s27, %s1679_s27 }
  0x12   :  { %p1686_p8 = por %p1685_p7, %p1684_p6 }
  0x14   :  { %p1687_p9 = pnand %p1686_p8, %p1680_p5 }
  0x16   :  { %1690 = shalt.err (!%p1687_p9)
}
  0x17   :  { %s1699_s28 = smov 64   ;;  %s1700_s29 = smov 4  }
  0x18   :  { %39 = dma.hbm_to_vmem [thread:$0]  %s1783_s3, 8192, %s34_s26, [#allocation5], %s1699_s28, %s1699_s28, %s1700_s29  }
  0x19   :  { %1691 = dma.done.wait [#allocation3], 8192  }
  0x1a   :  { %1692 = vsyncadd [#allocation3], 4294959104 }
  0x1b   :  { %1693 = dma.done.wait [#allocation5], 8192  }
  0x1c   :  { %1694 = vsyncadd [#allocation5], 4294959104  ;;  %v1701_v0 = vmov 0   ;;  %v107_v1 = vld [vmem:[#allocation2 + $0x1c0] sm:$0xff]  ;;  %v108_v3 = vld [vmem:[#allocation2 + $0x1c8] sm:$0xff] }
  0x1d   :  { %509 = vmatprep.mubr.bf16.mxu0 %v1701_v0  ;;  %550 = vmatprep.mubr.bf16.mxu1 %v1701_v0  ;;  %v111_v2 = vld [vmem:[#allocation2 + $0x1e0] sm:$0xff]  ;;  %v112_v5 = vld [vmem:[#allocation2 + $0x1e8] sm:$0xff]  ;;  %v109_v60 = vld [vmem:[#allocation2 + $0x1d0] sm:$0xff] }
  0x1e   :  { %v1415_v4 = vcombine.high %v107_v1, %v111_v2  ;;  %v1414_v6 = vcombine.low %v107_v1, %v111_v2  ;;  %v99_v7 = vld [vmem:[#allocation2 + $0x180] sm:$0xff]  ;;  %v1417_v9 = vcombine.high %v108_v3, %v112_v5  ;;  %v1416_v10 = vcombine.low %v108_v3, %v112_v5  ;;  %v100_v12 = vld [vmem:[#allocation2 + $0x188] sm:$0xff]  ;;  %v113_v63 = vld [vmem:[#allocation2 + $0x1f0] sm:$0xff] }
  0x1f   :  { %v103_v8 = vld [vmem:[#allocation2 + $0x1a0] sm:$0xff]  ;;  %v104_v13 = vld [vmem:[#allocation2 + $0x1a8] sm:$0xff]  ;;  %v110_v2 = vld [vmem:[#allocation2 + $0x1d8] sm:$0xff] }
  0x20   :  { %v1407_v11 = vcombine.high %v99_v7, %v103_v8  ;;  %v91_v14 = vld [vmem:[#allocation2 + $0x140] sm:$0xff]  ;;  %477 = vmatprep.subr.bf16.mxu0 %v1415_v4  ;;  %v1409_v15 = vcombine.high %v100_v12, %v104_v13  ;;  %v92_v17 = vld [vmem:[#allocation2 + $0x148] sm:$0xff]  ;;  %518 = vmatprep.subr.bf16.mxu1 %v1417_v9  ;;  %v1406_v19 = vcombine.low %v99_v7, %v103_v8  ;;  %v114_v3 = vld [vmem:[#allocation2 + $0x1f8] sm:$0xff] }
  0x21   :  { %v95_v16 = vld [vmem:[#allocation2 + $0x160] sm:$0xff]  ;;  %v96_v18 = vld [vmem:[#allocation2 + $0x168] sm:$0xff]  ;;  %478 = vmatpush1.bf16.msra.mxu0 %v1414_v6  ;;  %519 = vmatpush1.bf16.msra.mxu1 %v1416_v10  ;;  %v1408_v20 = vcombine.low %v100_v12, %v104_v13  ;;  %v101_v5 = vld [vmem:[#allocation2 + $0x190] sm:$0xff]  ;;  %v1419_v7 = vcombine.high %v109_v60, %v113_v63  ;;  %v1421_v10 = vcombine.high %v110_v2, %v114_v3 }
  0x22   :  { %479 = vmatprep.subr.bf16.mxu0 %v1407_v11  ;;  %v1399_v21 = vcombine.high %v91_v14, %v95_v16  ;;  %520 = vmatprep.subr.bf16.mxu1 %v1409_v15  ;;  %v1401_v22 = vcombine.high %v92_v17, %v96_v18  ;;  %v83_v23 = vld [vmem:[#allocation2 + $0x100] sm:$0xff]  ;;  %v84_v25 = vld [vmem:[#allocation2 + $0x108] sm:$0xff]  ;;  %v1398_v27 = vcombine.low %v91_v14, %v95_v16  ;;  %v105_v8 = vld [vmem:[#allocation2 + $0x1b0] sm:$0xff] }
  0x23   :  { %v87_v24 = vld [vmem:[#allocation2 + $0x120] sm:$0xff]  ;;  %v88_v26 = vld [vmem:[#allocation2 + $0x128] sm:$0xff]  ;;  %v1400_v28 = vcombine.low %v92_v17, %v96_v18  ;;  %v102_v11 = vld [vmem:[#allocation2 + $0x198] sm:$0xff]  ;;  %v1418_v13 = vcombine.low %v109_v60, %v113_v63  ;;  %v1420_v15 = vcombine.low %v110_v2, %v114_v3  ;;  %v1411_v16 = vcombine.high %v101_v5, %v105_v8 }
  0x24   :  { %v1391_v29 = vcombine.high %v83_v23, %v87_v24  ;;  %v1393_v30 = vcombine.high %v84_v25, %v88_v26  ;;  %v75_v31 = vld [vmem:[#allocation2 + $0xc0] sm:$0xff]  ;;  %v76_v33 = vld [vmem:[#allocation2 + $0xc8] sm:$0xff]  ;;  %v1390_v35 = vcombine.low %v83_v23, %v87_v24  ;;  %v1392_v36 = vcombine.low %v84_v25, %v88_v26  ;;  %v106_v12 = vld [vmem:[#allocation2 + $0x1b8] sm:$0xff] }
  0x25   :  { %480 = vmatpush1.bf16.msra.mxu0 %v1406_v19  ;;  %521 = vmatpush1.bf16.msra.mxu1 %v1408_v20  ;;  %v79_v32 = vld [vmem:[#allocation2 + $0xe0] sm:$0xff]  ;;  %v80_v34 = vld [vmem:[#allocation2 + $0xe8] sm:$0xff]  ;;  %v93_v14 = vld [vmem:[#allocation2 + $0x150] sm:$0xff]  ;;  %v1413_v18 = vcombine.high %v102_v11, %v106_v12  ;;  %v1412_v23 = vcombine.low %v102_v11, %v106_v12 }
  0x26   :  { %481 = vmatprep.subr.bf16.mxu0 %v1399_v21  ;;  %522 = vmatprep.subr.bf16.mxu1 %v1401_v22  ;;  %v1383_v37 = vcombine.high %v75_v31, %v79_v32  ;;  %v1385_v38 = vcombine.high %v76_v33, %v80_v34  ;;  %v67_v39 = vld [vmem:[#allocation2 + $0x80] sm:$0xff]  ;;  %v68_v41 = vld [vmem:[#allocation2 + $0x88] sm:$0xff]  ;;  %v1382_v43 = vcombine.low %v75_v31, %v79_v32  ;;  %v97_v17 = vld [vmem:[#allocation2 + $0x170] sm:$0xff] }
  0x27   :  { %v71_v40 = vld [vmem:[#allocation2 + $0xa0] sm:$0xff]  ;;  %v72_v42 = vld [vmem:[#allocation2 + $0xa8] sm:$0xff]  ;;  %v1384_v44 = vcombine.low %v76_v33, %v80_v34  ;;  %v94_v19 = vld [vmem:[#allocation2 + $0x158] sm:$0xff]  ;;  %v1410_v21 = vcombine.low %v101_v5, %v105_v8  ;;  %v1403_v24 = vcombine.high %v93_v14, %v97_v17 }
  0x28   :  { %v1375_v45 = vcombine.high %v67_v39, %v71_v40  ;;  %v1377_v46 = vcombine.high %v68_v41, %v72_v42  ;;  %v59_v47 = vld [vmem:[#allocation2 + $0x40] sm:$0xff]  ;;  %v60_v49 = vld [vmem:[#allocation2 + $0x48] sm:$0xff]  ;;  %v1374_v51 = vcombine.low %v67_v39, %v71_v40  ;;  %v1376_v52 = vcombine.low %v68_v41, %v72_v42  ;;  %v98_v20 = vld [vmem:[#allocation2 + $0x178] sm:$0xff] }
  0x29   :  { %482 = vmatpush1.bf16.msra.mxu0 %v1398_v27  ;;  %523 = vmatpush1.bf16.msra.mxu1 %v1400_v28  ;;  %v63_v48 = vld [vmem:[#allocation2 + $0x60] sm:$0xff]  ;;  %v64_v50 = vld [vmem:[#allocation2 + $0x68] sm:$0xff]  ;;  %v85_v22 = vld [vmem:[#allocation2 + $0x110] sm:$0xff]  ;;  %v1405_v26 = vcombine.high %v94_v19, %v98_v20  ;;  %v1404_v32 = vcombine.low %v94_v19, %v98_v20 }
  0x2a   :  { %483 = vmatprep.subr.bf16.mxu0 %v1391_v29  ;;  %524 = vmatprep.subr.bf16.mxu1 %v1393_v30  ;;  %v1367_v53 = vcombine.high %v59_v47, %v63_v48  ;;  %v51_v54 = vld [vmem:[#allocation2] sm:$0xff]  ;;  %v1369_v56 = vcombine.high %v60_v49, %v64_v50  ;;  %v52_v57 = vld [vmem:[#allocation2 + $0x8] sm:$0xff]  ;;  %v1366_v59 = vcombine.low %v59_v47, %v63_v48  ;;  %v89_v25 = vld [vmem:[#allocation2 + $0x130] sm:$0xff] }
  0x2b   :  { %v55_v55 = vld [vmem:[#allocation2 + $0x20] sm:$0xff]  ;;  %v56_v58 = vld [vmem:[#allocation2 + $0x28] sm:$0xff]  ;;  %v1368_v61 = vcombine.low %v60_v49, %v64_v50  ;;  %v86_v27 = vld [vmem:[#allocation2 + $0x118] sm:$0xff]  ;;  %v1402_v29 = vcombine.low %v93_v14, %v97_v17  ;;  %v1395_v33 = vcombine.high %v85_v22, %v89_v25 }
  0x2c   :  { %v1359_v62 = vcombine.high %v51_v54, %v55_v55  ;;  %v1361_v1 = vcombine.high %v52_v57, %v56_v58  ;;  %v1358_v4 = vcombine.low %v51_v54, %v55_v55  ;;  %v1360_v6 = vcombine.low %v52_v57, %v56_v58  ;;  %v1743_v9 = vld [vmem:[%s1780_s0] sm:$0xf]  ;;  %v90_v28 = vld [vmem:[#allocation2 + $0x138] sm:$0xff]  ;;  %v77_v30 = vld [vmem:[#allocation2 + $0xd0] sm:$0xff] }
  0x2d   :  { %484 = vmatpush1.bf16.msra.mxu0 %v1390_v35  ;;  %525 = vmatpush1.bf16.msra.mxu1 %v1392_v36  ;;  %v81_v31 = vld [vmem:[#allocation2 + $0xf0] sm:$0xff]  ;;  %v78_v34 = vld [vmem:[#allocation2 + $0xd8] sm:$0xff]  ;;  %v1397_v36 = vcombine.high %v86_v27, %v90_v28  ;;  %v1396_v40 = vcombine.low %v86_v27, %v90_v28  ;;  %v1591_v12 = vld [vmem:[#allocation4 + $0x68] sm:$0xff]  }
  0x2e   :  { %485 = vmatprep.subr.bf16.mxu0 %v1383_v37  ;;  %526 = vmatprep.subr.bf16.mxu1 %v1385_v38  ;;  %v82_v35 = vld [vmem:[#allocation2 + $0xf8] sm:$0xff]  ;;  %v1394_v37 = vcombine.low %v85_v22, %v89_v25  ;;  %v69_v38 = vld [vmem:[#allocation2 + $0x90] sm:$0xff]  ;;  %v1593_v14 = vld [vmem:[#allocation4 + $0x28] sm:$0xff]  }
  0x2f   :  { %v73_v39 = vld [vmem:[#allocation2 + $0xb0] sm:$0xff]  ;;  %v70_v41 = vld [vmem:[#allocation2 + $0x98] sm:$0xff]  ;;  %v1388_v47 = vcombine.low %v78_v34, %v82_v35  ;;  %v1596_v17 = vld [vmem:[#allocation4 + $0xe0] sm:$0xff]  }
  0x30   :  { %v74_v42 = vld [vmem:[#allocation2 + $0xb8] sm:$0xff]  ;;  %v1379_v48 = vcombine.high %v69_v38, %v73_v39  ;;  %v57_v54 = vld [vmem:[#allocation2 + $0x30] sm:$0xff]  ;;  %v1598_v19 = vld [vmem:[#allocation4 + $0xa0] sm:$0xff]  }
  0x31   :  { %486 = vmatpush1.bf16.msra.mxu0 %v1382_v43  ;;  %527 = vmatpush1.bf16.msra.mxu1 %v1384_v44  ;;  %v1389_v43 = vcombine.high %v78_v34, %v82_v35  ;;  %v1386_v44 = vcombine.low %v77_v30, %v81_v31  ;;  %v62_v49 = vld [vmem:[#allocation2 + $0x58] sm:$0xff]  ;;  %v1380_v55 = vcombine.low %v70_v41, %v74_v42  ;;  %v1588_v8 = vld [vmem:[#allocation4 + $0xf0] sm:$0xff]   ;;  %v1607_v27 = vld [vmem:[#allocation4 + $0x48] sm:$0xff]  }
  0x32   :  { %487 = vmatprep.subr.bf16.mxu0 %v1375_v45  ;;  %528 = vmatprep.subr.bf16.mxu1 %v1377_v46  ;;  %v61_v45 = vld [vmem:[#allocation2 + $0x50] sm:$0xff]  ;;  %v66_v50 = vld [vmem:[#allocation2 + $0x78] sm:$0xff]  ;;  %v1608_v28 = vld [vmem:[#allocation4 + $0xc8] sm:$0xff]  }
  0x33   :  { %v65_v46 = vld [vmem:[#allocation2 + $0x70] sm:$0xff]  ;;  %v54_v57 = vld [vmem:[#allocation2 + $0x18] sm:$0xff]  ;;  %v1614_v34 = vld [vmem:[#allocation4 + $0x80] sm:$0xff]  }
  0x34   :  { %v58_v58 = vld [vmem:[#allocation2 + $0x38] sm:$0xff]  ;;  %v1370_v60 = vcombine.low %v61_v45, %v65_v46  ;;  %v1590_v11 = vld [vmem:[#allocation4 + $0xb0] sm:$0xff]  }
  0x35   :  { %488 = vmatpush1.bf16.msra.mxu0 %v1374_v51  ;;  %529 = vmatpush1.bf16.msra.mxu1 %v1376_v52  ;;  %v1381_v51 = vcombine.high %v70_v41, %v74_v42  ;;  %v1378_v52 = vcombine.low %v69_v38, %v73_v39  ;;  %v1365_v63 = vcombine.high %v54_v57, %v58_v58  ;;  %v1584_v3 = vld [vmem:[#allocation4 + $0xf8] sm:$0xff]   ;;  %v1605_v25 = vld [vmem:[#allocation4 + $0x10] sm:$0xff]  }
  0x36   :  { %489 = vmatprep.subr.bf16.mxu0 %v1367_v53  ;;  %530 = vmatprep.subr.bf16.mxu1 %v1369_v56  ;;  %v53_v53 = vld [vmem:[#allocation2 + $0x10] sm:$0xff]  ;;  %v1371_v56 = vcombine.high %v61_v45, %v65_v46  ;;  %v1585_v5 = vld [vmem:[#allocation4 + $0x38] sm:$0xff]  }
  0x37   :  { %v1362_v2 = vcombine.low %v53_v53, %v57_v54  ;;  %v1599_v20 = vld [vmem:[#allocation4 + $0x58] sm:$0xff]  }
  0x38   :  { %v1602_v22 = vld [vmem:[#allocation4 + $0x98] sm:$0xff]  }
  0x39   :  { %490 = vmatpush1.bf16.msra.mxu0 %v1366_v59  ;;  %531 = vmatpush1.bf16.msra.mxu1 %v1368_v61  ;;  %v1373_v59 = vcombine.high %v62_v49, %v66_v50  ;;  %v1372_v61 = vcombine.low %v62_v49, %v66_v50  ;;  %v1615_v35 = vld [vmem:[#allocation4 + $0x178] sm:$0xff]  }
  0x3a   :  { %491 = vmatprep.subr.bf16.mxu0 %v1359_v62  ;;  %532 = vmatprep.subr.bf16.mxu1 %v1361_v1  ;;  %v1363_v62 = vcombine.high %v53_v53, %v57_v54  ;;  %v1583_v1 = vld [vmem:[#allocation4 + $0x78] sm:$0xff]  }
  0x3d   :  { %492 = vmatpush1.bf16.msra.mxu0 %v1358_v4  ;;  %533 = vmatpush1.bf16.msra.mxu1 %v1360_v6  ;;  %v1364_v4 = vcombine.low %v54_v57, %v58_v58  ;;  %v1586_v6 = vld [vmem:[#allocation4 + $0xb8] sm:$0xff]  }
  0x3e   :  { %559 = vmatprep.subr.bf16.mxu0 %v1419_v7  ;;  %600 = vmatprep.subr.bf16.mxu1 %v1421_v10  ;;  %v1587_v7 = vld [vmem:[#allocation4 + $0x70] sm:$0xff]  }
  0x3f   :  { %v1589_v10 = vld [vmem:[#allocation4 + $0x30] sm:$0xff]  }
  0x40   :  { %510 = vmatmul.mubr.bf16.vlgmr.msra.gmra.mxu0 %v1743_v9  ;;  %551 = vmatmul.mubr.bf16.vlgmr.msra.gmra.mxu1 %v1743_v9 }
  0x41   :  { %560 = vmatpush1.bf16.msra.mxu0 %v1418_v13  ;;  %601 = vmatpush1.bf16.msra.mxu1 %v1420_v15  ;;  %v1592_v13 = vld [vmem:[#allocation4 + $0xe8] sm:$0xff]  }
  0x42   :  { %561 = vmatprep.subr.bf16.mxu0 %v1411_v16  ;;  %602 = vmatprep.subr.bf16.mxu1 %v1413_v18  ;;  %v1594_v15 = vld [vmem:[#allocation4 + $0xa8] sm:$0xff]   ;;  %v1595_v16 = vld [vmem:[#allocation4 + $0x60] sm:$0xff]  }
  0x43   :  { %591 = vmatprep.mubr.bf16.mxu0 %v1701_v0  ;;  %632 = vmatprep.mubr.bf16.mxu1 %v1701_v0  ;;  %v1387_v0 = vcombine.high %v77_v30, %v81_v31  ;;  %v1597_v18 = vld [vmem:[#allocation4 + $0x20] sm:$0xff]   ;;  %v1610_v30 = vld [vmem:[#allocation4 + $0x88] sm:$0xff]  }
  0x44   :  { %v1611_v31 = vld [vmem:[#allocation4 + $0x40] sm:$0xff]  }
  0x45   :  { %562 = vmatpush1.bf16.msra.mxu0 %v1410_v21  ;;  %603 = vmatpush1.bf16.msra.mxu1 %v1412_v23  ;;  %v1601_v21 = vld [vmem:[#allocation4 + $0x18] sm:$0xff]   ;;  %v1603_v23 = vld [vmem:[#allocation4 + $0x50] sm:$0xff]  }
  0x46   :  { %563 = vmatprep.subr.bf16.mxu0 %v1403_v24  ;;  %604 = vmatprep.subr.bf16.mxu1 %v1405_v26  ;;  %v1604_v24 = vld [vmem:[#allocation4 + $0xd0] sm:$0xff]  }
  0x47   :  { %v1606_v26 = vld [vmem:[#allocation4 + $0x90] sm:$0xff]  }
  0x49   :  { %564 = vmatpush1.bf16.msra.mxu0 %v1402_v29  ;;  %605 = vmatpush1.bf16.msra.mxu1 %v1404_v32  ;;  %v1609_v29 = vld [vmem:[#allocation4 + $0x8] sm:$0xff]   ;;  %v1612_v32 = vld [vmem:[#allocation4 + $0xc0] sm:$0xff]  }
  0x4a   :  { %565 = vmatprep.subr.bf16.mxu0 %v1395_v33  ;;  %606 = vmatprep.subr.bf16.mxu1 %v1397_v36  ;;  %v1613_v33 = vld [vmem:[#allocation4] sm:$0xff]   ;;  %v1616_v36 = vld [vmem:[#allocation4 + $0x1f8] sm:$0xff]  }
  0x4d   :  { %566 = vmatpush1.bf16.msra.mxu0 %v1394_v37  ;;  %607 = vmatpush1.bf16.msra.mxu1 %v1396_v40  ;;  %v117_v37 = vlaneseq  ;;  %v1757_v40 = vld [vmem:[%s1782_s2] sm:$0xff] }
  0x4e   :  { %567 = vmatprep.subr.bf16.mxu0 %v1387_v0  ;;  %608 = vmatprep.subr.bf16.mxu1 %v1389_v43 }
  0x4f   :  { %v1751_v38 = vshrl.u32 %v117_v37, 7 }
  0x51   :  { %568 = vmatpush1.bf16.msra.mxu0 %v1386_v44  ;;  %609 = vmatpush1.bf16.msra.mxu1 %v1388_v47  ;;  %v119_v39 = vsub.s32 0, %v1751_v38  ;;  %v127_v0 = vsub.s32 2, %v1751_v38  ;;  %v123_v41 = vsub.s32 1, %v1751_v38  ;;  %v131_v42 = vsub.s32 3, %v1751_v38 }
  0x52   :  { %569 = vmatprep.subr.bf16.mxu0 %v1379_v48  ;;  %610 = vmatprep.subr.bf16.mxu1 %v1381_v51 }
  0x53   :  { %v120_v43 = vrot.slane %v1757_v40, %v119_v39  ;;  %v128_v44 = vrot.slane %v1757_v40, %v127_v0  ;;  %v124_v45 = vrot.slane %v1757_v40, %v123_v41  ;;  %v132_v47 = vrot.slane %v1757_v40, %v131_v42  ;;  %v1640_v39 = vld [vmem:[#allocation4 + $0x1c8] sm:$0xff]  }
  0x55   :  { %570 = vmatpush1.bf16.msra.mxu0 %v1378_v52  ;;  %611 = vmatpush1.bf16.msra.mxu1 %v1380_v55 }
  0x56   :  { %571 = vmatprep.subr.bf16.mxu0 %v1371_v56  ;;  %612 = vmatprep.subr.bf16.mxu1 %v1373_v59 }
  0x59   :  { %572 = vmatpush1.bf16.msra.mxu0 %v1370_v60  ;;  %613 = vmatpush1.bf16.msra.mxu1 %v1372_v61 }
  0x5a   :  { %573 = vmatprep.subr.bf16.mxu0 %v1363_v62  ;;  %614 = vmatprep.subr.bf16.mxu1 %v1365_v63 }
  0x5d   :  { %574 = vmatpush1.bf16.msra.mxu0 %v1362_v2  ;;  %615 = vmatpush1.bf16.msra.mxu1 %v1364_v4 }
  0x5e   :  { %1488 = vmatprep.subr.bf16.mxu0 %v1583_v1  ;;  %1510 = vmatprep.subr.bf16.mxu1 %v1584_v3 }
  0x60   :  { %592 = vmatmul.mubr.bf16.vlgmr.msra.gmra.mxu0 %v1743_v9  ;;  %633 = vmatmul.mubr.bf16.vlgmr.msra.gmra.mxu1 %v1743_v9  ;;  %v1600_v9 = vld [vmem:[#allocation4 + $0xd8] sm:$0xff]  }
  0x61   :  { %1489 = vmatpush3.bf16.msra.mxu0 %v1585_v5  ;;  %1511 = vmatpush3.bf16.msra.mxu1 %v1586_v6  ;;  %v1617_v5 = vld [vmem:[#allocation4 + $0x138] sm:$0xff]  }
  0x62   :  { %1490 = vmatprep.subr.bf16.mxu0 %v1587_v7  ;;  %1512 = vmatprep.subr.bf16.mxu1 %v1588_v8  ;;  %v1618_v8 = vld [vmem:[#allocation4 + $0x1b8] sm:$0xff]  }
  0x65   :  { %1491 = vmatpush3.bf16.msra.mxu0 %v1589_v10  ;;  %1513 = vmatpush3.bf16.msra.mxu1 %v1590_v11  ;;  %v1619_v10 = vld [vmem:[#allocation4 + $0x170] sm:$0xff]  }
  0x66   :  { %1492 = vmatprep.subr.bf16.mxu0 %v1591_v12  ;;  %1514 = vmatprep.subr.bf16.mxu1 %v1592_v13  ;;  %v1620_v12 = vld [vmem:[#allocation4 + $0x1f0] sm:$0xff]  }
  0x67   :  { %v1621_v13 = vld [vmem:[#allocation4 + $0x130] sm:$0xff]  }
  0x69   :  { %1493 = vmatpush3.bf16.msra.mxu0 %v1593_v14  ;;  %1515 = vmatpush3.bf16.msra.mxu1 %v1594_v15  ;;  %v1622_v14 = vld [vmem:[#allocation4 + $0x1b0] sm:$0xff]   ;;  %v1623_v15 = vld [vmem:[#allocation4 + $0x168] sm:$0xff]  }
  0x6a   :  { %1494 = vmatprep.subr.bf16.mxu0 %v1595_v16  ;;  %1516 = vmatprep.subr.bf16.mxu1 %v1596_v17  ;;  %v1624_v16 = vld [vmem:[#allocation4 + $0x1e8] sm:$0xff]  }
  0x6b   :  { %v1625_v17 = vld [vmem:[#allocation4 + $0x128] sm:$0xff]  }
  0x6d   :  { %1495 = vmatpush3.bf16.msra.mxu0 %v1597_v18  ;;  %1517 = vmatpush3.bf16.msra.mxu1 %v1598_v19  ;;  %v1626_v18 = vld [vmem:[#allocation4 + $0x1a8] sm:$0xff]   ;;  %v1627_v19 = vld [vmem:[#allocation4 + $0x160] sm:$0xff]  }
  0x6e   :  { %1496 = vmatprep.subr.bf16.mxu0 %v1599_v20  ;;  %1518 = vmatprep.subr.bf16.mxu1 %v1600_v9  ;;  %v1628_v20 = vld [vmem:[#allocation4 + $0x1e0] sm:$0xff]  }
  0x6f   :  { %v1629_v9 = vld [vmem:[#allocation4 + $0x120] sm:$0xff]  }
  0x71   :  { %1497 = vmatpush3.bf16.msra.mxu0 %v1601_v21  ;;  %1519 = vmatpush3.bf16.msra.mxu1 %v1602_v22  ;;  %v1630_v21 = vld [vmem:[#allocation4 + $0x1a0] sm:$0xff]   ;;  %v1631_v22 = vld [vmem:[#allocation4 + $0x158] sm:$0xff]  }
  0x72   :  { %1498 = vmatprep.subr.bf16.mxu0 %v1603_v23  ;;  %1520 = vmatprep.subr.bf16.mxu1 %v1604_v24  ;;  %v1632_v23 = vld [vmem:[#allocation4 + $0x1d8] sm:$0xff]  }
  0x73   :  { %v1633_v24 = vld [vmem:[#allocation4 + $0x118] sm:$0xff]  }
  0x75   :  { %1499 = vmatpush3.bf16.msra.mxu0 %v1605_v25  ;;  %1521 = vmatpush3.bf16.msra.mxu1 %v1606_v26  ;;  %v135_v25 = vsub.s32 4, %v1751_v38  ;;  %v1634_v26 = vld [vmem:[#allocation4 + $0x198] sm:$0xff]  }
  0x76   :  { %1500 = vmatprep.subr.bf16.mxu0 %v1607_v27  ;;  %1522 = vmatprep.subr.bf16.mxu1 %v1608_v28  ;;  %v143_v27 = vsub.s32 6, %v1751_v38  ;;  %v1635_v28 = vld [vmem:[#allocation4 + $0x150] sm:$0xff]  }
  0x79   :  { %1501 = vmatpush3.bf16.msra.mxu0 %v1609_v29  ;;  %1523 = vmatpush3.bf16.msra.mxu1 %v1610_v30  ;;  %v1636_v29 = vld [vmem:[#allocation4 + $0x1d0] sm:$0xff]   ;;  %v139_v30 = vsub.s32 5, %v1751_v38 }
  0x7a   :  { %1502 = vmatprep.subr.bf16.mxu0 %v1611_v31  ;;  %1524 = vmatprep.subr.bf16.mxu1 %v1612_v32  ;;  %v147_v31 = vsub.s32 7, %v1751_v38  ;;  %v136_v32 = vrot.slane %v1757_v40, %v135_v25  ;;  %v1641_v38 = vld [vmem:[#allocation4 + $0x108] sm:$0xff]  }
  0x7b   :  { %v140_v37 = vrot.slane %v1757_v40, %v139_v30 }
  0x7c   :  { %v148_v41 = vrot.slane %v1757_v40, %v147_v31 }
  0x7d   :  { %1503 = vmatpush3.bf16.msra.mxu0 %v1613_v33  ;;  %1525 = vmatpush3.bf16.msra.mxu1 %v1614_v34  ;;  %v1637_v33 = vld [vmem:[#allocation4 + $0x110] sm:$0xff]   ;;  %v144_v34 = vrot.slane %v1757_v40, %v143_v27 }
  0x7e   :  { %1532 = vmatprep.subr.bf16.mxu0 %v1615_v35  ;;  %1554 = vmatprep.subr.bf16.mxu1 %v1616_v36  ;;  %v1638_v35 = vld [vmem:[#allocation4 + $0x190] sm:$0xff]   ;;  %v1639_v36 = vld [vmem:[#allocation4 + $0x148] sm:$0xff]  }
 0x100   :  { %v511_v46 = vpop.f32.mrf.mxu0  ;;  %v552_v49 = vpop.f32.mrf.mxu1 }
 0x101   :  { %v512_v48 = vadd.f32 %v511_v46, %v120_v43  ;;  %v553_v50 = vadd.f32 %v552_v49, %v128_v44  ;;  %v1642_v46 = vld [vmem:[#allocation4 + $0x188] sm:$0xff]  }
 0x102   :  { %v513_v51 = vpop.f32.mrf.mxu0  ;;  %v554_v54 = vpop.f32.mrf.mxu1 }
 0x103   :  { %v641_v52 = vpack.c.bf16 %v512_v48, %v512_v48  ;;  %v514_v53 = vadd.f32 %v513_v51, %v124_v45  ;;  %v643_v55 = vpack.c.bf16 %v553_v50, %v553_v50  ;;  %v555_v56 = vadd.f32 %v554_v54, %v132_v47  ;;  %v1643_v47 = vld [vmem:[#allocation4 + $0x140] sm:$0xff]  }
 0x104   :  { %v515_v57 = vpop.f32.mrf.mxu0  ;;  %v556_v59 = vpop.f32.mrf.mxu1  ;;  %v1644_v51 = vld [vmem:[#allocation4 + $0x1c0] sm:$0xff]  }
 0x105   :  { %v642_v58 = vpack.c.bf16 %v514_v53, %v514_v53  ;;  %v649_v60 = vmul.bf16 1045249613, %v641_v52  ;;  %v644_v61 = vpack.c.bf16 %v555_v56, %v555_v56  ;;  %v651_v63 = vmul.bf16 1045249613, %v643_v55  ;;  %v1645_v56 = vld [vmem:[#allocation4 + $0x100] sm:$0xff]  }
 0x106   :  { %v516_v62 = vpop.f32.mrf.mxu0  ;;  %v557_v2 = vpop.f32.mrf.mxu1 }
 0x107   :  { %v650_v1 = vmul.bf16 1045249613, %v642_v58  ;;  %v652_v3 = vmul.bf16 1045249613, %v644_v61  ;;  %v657_v6 = vmax.bf16 %v649_v60, %v641_v52  ;;  %v659_v11 = vmax.bf16 %v651_v63, %v643_v55  ;;  %v1646_v60 = vld [vmem:[#allocation4 + $0x180] sm:$0xff]  }
 0x109   :  { %v658_v4 = vmax.bf16 %v650_v1, %v642_v58  ;;  %v660_v7 = vmax.bf16 %v652_v3, %v644_v61 }
 0x10b   :  { %1216 = vmatprep.mubr.bf16.mxu0 %v658_v4  ;;  %1256 = vmatprep.mubr.bf16.mxu1 %v660_v7 }
 0x10c   :  { %1217 = vmatmul.mubr.bf16.vlgmr.msra.gmra.mxu0 %v657_v6  ;;  %1257 = vmatmul.mubr.bf16.vlgmr.msra.gmra.mxu1 %v659_v11 }
 0x10d   :  { %1533 = vmatpush3.bf16.msra.mxu0 %v1617_v5  ;;  %1555 = vmatpush3.bf16.msra.mxu1 %v1618_v8 }
 0x10e   :  { %1534 = vmatprep.subr.bf16.mxu0 %v1619_v10  ;;  %1556 = vmatprep.subr.bf16.mxu1 %v1620_v12 }
 0x111   :  { %1535 = vmatpush3.bf16.msra.mxu0 %v1621_v13  ;;  %1557 = vmatpush3.bf16.msra.mxu1 %v1622_v14 }
 0x112   :  { %1536 = vmatprep.subr.bf16.mxu0 %v1623_v15  ;;  %1558 = vmatprep.subr.bf16.mxu1 %v1624_v16  ;;  %v1422_v16 = vld [vmem:[%s1784_s4] ss:$0 sm:$0xff] }
 0x115   :  { %1537 = vmatpush3.bf16.msra.mxu0 %v1625_v17  ;;  %1559 = vmatpush3.bf16.msra.mxu1 %v1626_v18 }
 0x116   :  { %1538 = vmatprep.subr.bf16.mxu0 %v1627_v19  ;;  %1560 = vmatprep.subr.bf16.mxu1 %v1628_v20 }
 0x119   :  { %1539 = vmatpush3.bf16.msra.mxu0 %v1629_v9  ;;  %1561 = vmatpush3.bf16.msra.mxu1 %v1630_v21 }
 0x11a   :  { %1540 = vmatprep.subr.bf16.mxu0 %v1631_v22  ;;  %1562 = vmatprep.subr.bf16.mxu1 %v1632_v23 }
 0x11d   :  { %1541 = vmatpush3.bf16.msra.mxu0 %v1633_v24  ;;  %1563 = vmatpush3.bf16.msra.mxu1 %v1634_v26 }
 0x11e   :  { %1542 = vmatprep.subr.bf16.mxu0 %v1635_v28  ;;  %1564 = vmatprep.subr.bf16.mxu1 %v1636_v29 }
 0x120   :  { %v593_v0 = vpop.f32.mrf.mxu0  ;;  %v634_v43 = vpop.f32.mrf.mxu1 }
 0x121   :  { %v594_v42 = vadd.f32 %v593_v0, %v136_v32  ;;  %1543 = vmatpush3.bf16.msra.mxu0 %v1637_v33  ;;  %v635_v44 = vadd.f32 %v634_v43, %v144_v34  ;;  %1565 = vmatpush3.bf16.msra.mxu1 %v1638_v35 }
 0x122   :  { %v595_v45 = vpop.f32.mrf.mxu0  ;;  %1544 = vmatprep.subr.bf16.mxu0 %v1639_v36  ;;  %v636_v50 = vpop.f32.mrf.mxu1  ;;  %1566 = vmatprep.subr.bf16.mxu1 %v1640_v39 }
 0x123   :  { %v645_v48 = vpack.c.bf16 %v594_v42, %v594_v42  ;;  %v596_v49 = vadd.f32 %v595_v45, %v140_v37  ;;  %v647_v52 = vpack.c.bf16 %v635_v44, %v635_v44  ;;  %v637_v53 = vadd.f32 %v636_v50, %v148_v41 }
 0x124   :  { %v597_v54 = vpop.f32.mrf.mxu0  ;;  %v638_v40 = vpop.f32.mrf.mxu1 }
 0x125   :  { %v646_v55 = vpack.c.bf16 %v596_v49, %v596_v49  ;;  %1545 = vmatpush3.bf16.msra.mxu0 %v1641_v38  ;;  %v653_v57 = vmul.bf16 1045249613, %v645_v48  ;;  %v648_v58 = vpack.c.bf16 %v637_v53, %v637_v53  ;;  %1567 = vmatpush3.bf16.msra.mxu1 %v1642_v46  ;;  %v655_v61 = vmul.bf16 1045249613, %v647_v52 }
 0x126   :  { %v598_v59 = vpop.f32.mrf.mxu0  ;;  %1546 = vmatprep.subr.bf16.mxu0 %v1643_v47  ;;  %v639_v63 = vpop.f32.mrf.mxu1  ;;  %1568 = vmatprep.subr.bf16.mxu1 %v1644_v51 }
 0x127   :  { %v654_v62 = vmul.bf16 1045249613, %v646_v55  ;;  %v656_v1 = vmul.bf16 1045249613, %v648_v58  ;;  %v661_v3 = vmax.bf16 %v653_v57, %v645_v48  ;;  %v663_v5 = vmax.bf16 %v655_v61, %v647_v52 }
 0x129   :  { %v662_v2 = vmax.bf16 %v654_v62, %v646_v55  ;;  %1547 = vmatpush3.bf16.msra.mxu0 %v1645_v56  ;;  %v664_v4 = vmax.bf16 %v656_v1, %v648_v58  ;;  %1569 = vmatpush3.bf16.msra.mxu1 %v1646_v60 }
 0x12b   :  { %1296 = vmatprep.mubr.bf16.mxu0 %v662_v2  ;;  %1336 = vmatprep.mubr.bf16.mxu1 %v664_v4 }
 0x12c   :  { %1297 = vmatmul.mubr.bf16.vlgmr.msra.gmra.mxu0 %v661_v3  ;;  %1337 = vmatmul.mubr.bf16.vlgmr.msra.gmra.mxu1 %v663_v5 }
 0x1cc   :  { %v1504_v6 = vpop.f32.mrf.mxu0  ;;  %v1526_v7 = vpop.f32.mrf.mxu1 }
 0x1ce   :  { %v1505_v8 = vpop.f32.mrf.mxu0  ;;  %v1527_v10 = vpop.f32.mrf.mxu1 }
 0x1cf   :  { %v1506_v15 = vadd.f32 %v1505_v8, %v1504_v6  ;;  %v1528_v19 = vadd.f32 %v1527_v10, %v1526_v7 }
 0x1d0   :  { %v1507_v11 = vpop.f32.mrf.mxu0  ;;  %v1529_v12 = vpop.f32.mrf.mxu1 }
 0x1d1   :  { %v1219_v17 = vadd.f32 %v1506_v15, %v1422_v16 }
 0x1d2   :  { %v1508_v13 = vpop.f32.mrf.mxu0  ;;  %v1530_v14 = vpop.f32.mrf.mxu1 }
 0x1d3   :  { %v1259_v21 = vadd.f32 %v1528_v19, %v1219_v17 }
 0x1ec   :  { %v1548_v18 = vpop.f32.mrf.mxu0  ;;  %v1570_v20 = vpop.f32.mrf.mxu1 }
 0x1ee   :  { %v1549_v9 = vpop.f32.mrf.mxu0  ;;  %v1571_v23 = vpop.f32.mrf.mxu1 }
 0x1ef   :  { %v1550_v22 = vadd.f32 %v1549_v9, %v1548_v18  ;;  %v1572_v26 = vadd.f32 %v1571_v23, %v1570_v20 }
 0x1f0   :  { %v1551_v24 = vpop.f32.mrf.mxu0  ;;  %v1573_v27 = vpop.f32.mrf.mxu1 }
 0x1f1   :  { %v1299_v25 = vadd.f32 %v1550_v22, %v1259_v21 }
 0x1f2   :  { %v1552_v28 = vpop.f32.mrf.mxu0  ;;  %v1574_v30 = vpop.f32.mrf.mxu1 }
 0x1f3   :  { %v1339_v29 = vadd.f32 %v1572_v26, %v1299_v25 }
 0x1f5   :  { %v1487_v31 = vmul.f32 -1.442695, %v1339_v29 }
 0x1f7   :  { %1647 = vpow2.f32 %v1487_v31 }
 0x204   :  { %v1648_v32 = vpop.eup %1647 }
 0x205   :  { %v1347_v33 = vadd.f32 1.0, %v1648_v32 }
 0x207   :  { %1649 = vrcp.f32 %v1347_v33 }
 0x214   :  { %v1650_v34 = vpop.eup %1649 }
 0x215   :  { %v1350_v35 = vpack.c.bf16 %v1650_v34, %v1650_v34 }
 0x217   :  { %1351 = vst [vmem:[%s1785_s5] sm:$0xf] %v1350_v35 }
 0x218   :  { %1356 = vsyncpa [#allocation3], 1 }
 0x219   :  { %1357 = vsyncpa [#allocation5], 1 }

</bundles_post_ra>
